<compile_context>
chip_gen: v7x
topology: tpu7x:2x2x1
jax: 0.10.0
libtpu: 0.0.40
codegen_flags: <defaults>
</compile_context>

<pallas_src>
import jax
import jax.numpy as jnp
from jax.experimental import pallas as pl
from jax.experimental.pallas import tpu as pltpu


def se_block_kernel(x_ref, w1_ref, b1_ref, w2_ref, b2_ref, o_ref):
    # x_ref / o_ref: (TB, C, HW) -- native NCHW flattening, HW on the lane axis.

    # --- squeeze: global average pool over the spatial (lane) axis, in f32 ---
    y = jnp.mean(x_ref[...].astype(jnp.float32), axis=-1)               # (TB, C)

    # --- excitation: FC -> ReLU -> FC -> Sigmoid (tiny MXU matmuls) ---
    h = jnp.dot(y, w1_ref[...], preferred_element_type=jnp.float32) + b1_ref[...]
    h = jnp.maximum(h, 0.0)                                              # (TB, Hp)
    s = jnp.dot(h, w2_ref[...], preferred_element_type=jnp.float32) + b2_ref[...]
    s = jax.nn.sigmoid(s)                                                # (TB, C)

    # --- scale: re-read x_ref (keeps live ranges short) and multiply/store in
    #     the input dtype -- no f32 widening of the big tile.
    o_ref[...] = x_ref[...] * s[:, :, None].astype(o_ref.dtype)


def se_block(x, w1, b1, w2, b2, *, tile_bytes_budget=6 << 20):
    """x: (B, C, H, W). Returns (B, C, H, W). Works natively on (B, C, H*W)."""
    B, C, H, W = x.shape
    HW = H * W
    hidden = w1.shape[1]
    itemsize = jnp.dtype(x.dtype).itemsize

    # Pad the bottleneck width to one full 128-lane vreg (zero columns of w1 /
    # zero entries of b1 give ReLU outputs of 0; the matching zero rows of w2
    # contribute nothing) -- exact semantics, lane-dense tiny matmuls.
    hidden_p = ((hidden + 127) // 128) * 128 if hidden > 0 else 128
    hidden_p = max(hidden_p, 128)
    w1_p = jnp.zeros((C, hidden_p), jnp.float32).at[:, :hidden].set(w1.astype(jnp.float32))
    b1_p = jnp.zeros((1, hidden_p), jnp.float32).at[:, :hidden].set(b1.astype(jnp.float32))
    w2_p = jnp.zeros((hidden_p, C), jnp.float32).at[:hidden, :].set(w2.astype(jnp.float32))
    b2_p = b2.reshape(1, C).astype(jnp.float32)

    # Free reshape (trailing dims merge) -- no wrapper-side transpose / HBM copy.
    x_flat = x.reshape(B, C, HW)

    # Batch TB images per grid step, sized so double-buffered in+out tiles stay
    # comfortably inside VMEM on every generation (v7x: 64 MiB physical).
    per_batch_bytes = C * HW * itemsize
    tb = int(max(1, min(B, tile_bytes_budget // max(1, per_batch_bytes))))
    grid = (pl.cdiv(B, tb),)

    tile_bytes = tb * per_batch_bytes
    weight_bytes = (C * hidden_p + hidden_p + hidden_p * C + C) * 4
    vmem_limit = int(min(max(4 * tile_bytes + 2 * weight_bytes + (2 << 20), 16 << 20),
                         48 << 20))

    cost = pl.CostEstimate(
        flops=2 * B * C * hidden_p + 2 * B * hidden_p * C + 2 * B * C * HW,
        transcendentals=B * C,                       # sigmoid
        bytes_accessed=2 * B * C * HW * itemsize + weight_bytes,
    )

    out_flat = pl.pallas_call(
        se_block_kernel,
        out_shape=jax.ShapeDtypeStruct((B, C, HW), x.dtype),
        grid_spec=pltpu.PrefetchScalarGridSpec(
            num_scalar_prefetch=0,
            grid=grid,
            in_specs=[
                pl.BlockSpec((tb, C, HW), lambda b: (b, 0, 0)),     # x tile
                pl.BlockSpec((C, hidden_p), lambda b: (0, 0)),      # w1 (padded)
                pl.BlockSpec((1, hidden_p), lambda b: (0, 0)),      # b1 (padded)
                pl.BlockSpec((hidden_p, C), lambda b: (0, 0)),      # w2 (padded)
                pl.BlockSpec((1, C), lambda b: (0, 0)),             # b2
            ],
            out_specs=pl.BlockSpec((tb, C, HW), lambda b: (b, 0, 0)),
        ),
        compiler_params=pltpu.CompilerParams(
            dimension_semantics=("parallel",),     # batch loop shards across TCs
            vmem_limit_bytes=vmem_limit,
        ),
        cost_estimate=cost,
    )(x_flat, w1_p, b1_p, w2_p, b2_p)

    return out_flat.reshape(B, C, H, W)


def init_se_params(key, in_channels, reduction=16):
    """Deterministic init mimicking torch.nn.Linear defaults (uniform +/- 1/sqrt(fan_in))."""
    hidden = in_channels // reduction
    k1, k2, k3, k4 = jax.random.split(key, 4)
    bound1 = 1.0 / jnp.sqrt(in_channels)
    bound2 = 1.0 / jnp.sqrt(hidden)
    # stored transposed relative to torch.nn.Linear.weight: (in, out)
    w1 = jax.random.uniform(k1, (in_channels, hidden), jnp.float32, -bound1, bound1)
    b1 = jax.random.uniform(k2, (hidden,), jnp.float32, -bound1, bound1)
    w2 = jax.random.uniform(k3, (hidden, in_channels), jnp.float32, -bound2, bound2)
    b2 = jax.random.uniform(k4, (in_channels,), jnp.float32, -bound2, bound2)
    return w1, b1, w2, b2


def se_block_ref(x, w1, b1, w2, b2):
    """Pure-JAX reference of the PyTorch forward for sanity checking."""
    y = jnp.mean(x, axis=(2, 3))                       # (B, C)
    h = jnp.maximum(y @ w1 + b1, 0.0)                  # (B, C//r)
    s = jax.nn.sigmoid(h @ w2 + b2)                    # (B, C)
    return x * s[:, :, None, None]


if __name__ == "__main__":
    key = jax.random.PRNGKey(0)
    kx, kp = jax.random.split(key)

    B, C, H, W = 2, 64, 16, 16        # in_channels=64, reduction=16 -> hidden=4
    x = jax.random.normal(kx, (B, C, H, W), dtype=jnp.float32)
    w1, b1, w2, b2 = init_se_params(kp, C, reduction=16)

    out = jax.block_until_ready(se_block(x, w1, b1, w2, b2))

    ref = se_block_ref(x, w1, b1, w2, b2)
    assert out.shape == (B, C, H, W)
    assert jnp.allclose(out, ref, atol=1e-5, rtol=1e-5), "mismatch vs reference"

    print("KERNEL_OK")
</pallas_src>

<mosaic_0001>
module attributes {stable_mosaic.version = 11 : i64} {
  func.func @se_block_kernel(%arg0: i32, %arg1: memref<2x64x256xf32, #tpu.memory_space<vmem>>, %arg2: memref<64x128xf32, #tpu.memory_space<vmem>>, %arg3: memref<1x128xf32, #tpu.memory_space<vmem>>, %arg4: memref<128x64xf32, #tpu.memory_space<vmem>>, %arg5: memref<1x64xf32, #tpu.memory_space<vmem>>, %arg6: memref<2x64x256xf32, #tpu.memory_space<vmem>>) attributes {dimension_semantics = [#tpu.dimension_semantics<parallel>], iteration_bounds = array<i64: 1>, scalar_prefetch = 0 : i64, scratch_operands = 0 : i64, tpu.core_type = #tpu.core_type<tc>, window_params = [{transform_indices = @transform_0, window_bounds = array<i64: 2, 64, 256>}, {pipeline_mode = #tpu.pipeline_mode<synchronous>, transform_indices = @transform_1, window_bounds = array<i64: 64, 128>}, {pipeline_mode = #tpu.pipeline_mode<synchronous>, transform_indices = @transform_2, window_bounds = array<i64: 1, 128>}, {pipeline_mode = #tpu.pipeline_mode<synchronous>, transform_indices = @transform_3, window_bounds = array<i64: 128, 64>}, {pipeline_mode = #tpu.pipeline_mode<synchronous>, transform_indices = @transform_4, window_bounds = array<i64: 1, 64>}, {transform_indices = @transform_5, window_bounds = array<i64: 2, 64, 256>}]} {
    %c0 = arith.constant 0 : index
    %c0_0 = arith.constant 0 : index
    %c0_1 = arith.constant 0 : index
    %0 = vector.load %arg1[%c0, %c0_0, %c0_1] : memref<2x64x256xf32, #tpu.memory_space<vmem>>, vector<2x64x256xf32>
    %cst = arith.constant dense<0.000000e+00> : vector<2x64xf32>
    %1 = vector.multi_reduction <add>, %0, %cst [2] : vector<2x64x256xf32> to vector<2x64xf32>
    %cst_2 = arith.constant 2.560000e+02 : f32
    %2 = vector.broadcast %cst_2 : f32 to vector<2x64xf32>
    %3 = arith.divf %1, %2 : vector<2x64xf32>
    %c0_3 = arith.constant 0 : index
    %c0_4 = arith.constant 0 : index
    %4 = vector.load %arg2[%c0_3, %c0_4] : memref<64x128xf32, #tpu.memory_space<vmem>>, vector<64x128xf32>
    %cst_5 = arith.constant dense<0.000000e+00> : vector<2x128xf32>
    %5 = tpu.matmul %3, %4, %cst_5 {dimension_numbers = #tpu.dot_dimension_numbers<[1], [0], [0], [1], [0, 0, 1, 1], [], []>} : vector<2x64xf32>, vector<64x128xf32>, vector<2x128xf32> -> vector<2x128xf32>
    %c0_6 = arith.constant 0 : index
    %c0_7 = arith.constant 0 : index
    %6 = vector.load %arg3[%c0_6, %c0_7] : memref<1x128xf32, #tpu.memory_space<vmem>>, vector<1x128xf32>
    %7 = vector.broadcast %6 : vector<1x128xf32> to vector<2x128xf32>
    %8 = arith.addf %5, %7 : vector<2x128xf32>
    %cst_8 = arith.constant 0.000000e+00 : f32
    %9 = vector.broadcast %cst_8 : f32 to vector<2x128xf32>
    %10 = arith.maximumf %8, %9 : vector<2x128xf32>
    %c0_9 = arith.constant 0 : index
    %c0_10 = arith.constant 0 : index
    %11 = vector.load %arg4[%c0_9, %c0_10] : memref<128x64xf32, #tpu.memory_space<vmem>>, vector<128x64xf32>
    %cst_11 = arith.constant dense<0.000000e+00> : vector<2x64xf32>
    %12 = tpu.matmul %10, %11, %cst_11 {dimension_numbers = #tpu.dot_dimension_numbers<[1], [0], [0], [1], [0, 0, 1, 1], [], []>} : vector<2x128xf32>, vector<128x64xf32>, vector<2x64xf32> -> vector<2x64xf32>
    %c0_12 = arith.constant 0 : index
    %c0_13 = arith.constant 0 : index
    %13 = vector.load %arg5[%c0_12, %c0_13] : memref<1x64xf32, #tpu.memory_space<vmem>>, vector<1x64xf32>
    %14 = vector.broadcast %13 : vector<1x64xf32> to vector<2x64xf32>
    %15 = arith.addf %12, %14 : vector<2x64xf32>
    %16 = arith.negf %15 : vector<2x64xf32>
    %17 = math.exp %16 : vector<2x64xf32>
    %cst_14 = arith.constant 1.000000e+00 : f32
    %18 = vector.broadcast %cst_14 : f32 to vector<2x64xf32>
    %19 = arith.addf %18, %17 : vector<2x64xf32>
    %20 = arith.divf %18, %19 : vector<2x64xf32>
    %c0_15 = arith.constant 0 : index
    %c0_16 = arith.constant 0 : index
    %c0_17 = arith.constant 0 : index
    %21 = vector.load %arg1[%c0_15, %c0_16, %c0_17] : memref<2x64x256xf32, #tpu.memory_space<vmem>>, vector<2x64x256xf32>
    %22 = vector.shape_cast %20 : vector<2x64xf32> to vector<2x64x1xf32>
    %23 = vector.broadcast %22 : vector<2x64x1xf32> to vector<2x64x256xf32>
    %24 = arith.mulf %21, %23 : vector<2x64x256xf32>
    %c0_18 = arith.constant 0 : index
    %c0_19 = arith.constant 0 : index
    %c0_20 = arith.constant 0 : index
    %25 = vector.load %arg6[%c0_18, %c0_19, %c0_20] : memref<2x64x256xf32, #tpu.memory_space<vmem>>, vector<2x64x256xf32>
    tpu.vector_store %arg6[%c0_18, %c0_19, %c0_20], %24 {strides = array<i32>} : memref<2x64x256xf32, #tpu.memory_space<vmem>>, vector<2x64x256xf32>,
    return
  }
  func.func @transform_0(%arg0: i32) -> (i32, i32, i32) {
    %c0_i32 = arith.constant 0 : i32
    %c0_i32_0 = arith.constant 0 : i32
    %c0_i32_1 = arith.constant 0 : i32
    return %arg0, %c0_i32, %c0_i32_0 : i32, i32, i32
  }
  func.func @transform_1(%arg0: i32) -> (i32, i32) {
    %c0_i32 = arith.constant 0 : i32
    %c0_i32_0 = arith.constant 0 : i32
    %c0_i32_1 = arith.constant 0 : i32
    return %c0_i32, %c0_i32_0 : i32, i32
  }
  func.func @transform_2(%arg0: i32) -> (i32, i32) {
    %c0_i32 = arith.constant 0 : i32
    %c0_i32_0 = arith.constant 0 : i32
    %c0_i32_1 = arith.constant 0 : i32
    return %c0_i32, %c0_i32_0 : i32, i32
  }
  func.func @transform_3(%arg0: i32) -> (i32, i32) {
    %c0_i32 = arith.constant 0 : i32
    %c0_i32_0 = arith.constant 0 : i32
    %c0_i32_1 = arith.constant 0 : i32
    return %c0_i32, %c0_i32_0 : i32, i32
  }
  func.func @transform_4(%arg0: i32) -> (i32, i32) {
    %c0_i32 = arith.constant 0 : i32
    %c0_i32_0 = arith.constant 0 : i32
    %c0_i32_1 = arith.constant 0 : i32
    return %c0_i32, %c0_i32_0 : i32, i32
  }
  func.func @transform_5(%arg0: i32) -> (i32, i32, i32) {
    %c0_i32 = arith.constant 0 : i32
    %c0_i32_0 = arith.constant 0 : i32
    %c0_i32_1 = arith.constant 0 : i32
    return %arg0, %c0_i32, %c0_i32_0 : i32, i32, i32
  }
}

</mosaic_0001>

<bundles_post_ra>
// kernel: tpu_custom_call.1
= control target key start
LH: loop header
LB: loop body
LE: loop exit
PB: predicated region body
PF: predicated region fallthrough
CT: control target
= control target key end

     0   :  { %10 = vsyncpa [#allocation3], 0  ;;  %s1059_s0 = inlined_call_operand.hbm [shape: f32[2,64,256], index: 0, kind: input, shape index: {}]   ;;  %s1060_s1 = inlined_call_operand.vmem [shape: f32[64,128], index: 1, kind: input, shape index: {}]   ;;  %s1061_s2 = inlined_call_operand.vmem [shape: f32[1,128], index: 2, kind: input, shape index: {}]   ;;  %s1062_s3 = inlined_call_operand.vmem [shape: f32[128,64], index: 3, kind: input, shape index: {}]   ;;  %s1063_s4 = inlined_call_operand.vmem [shape: f32[1,64], index: 4, kind: input, shape index: {}]   ;;  %s1064_s5 = inlined_call_operand.hbm [shape: f32[2,64,256], index: 5, kind: output, shape index: {}]  }
   0x1   :  { %11 = vsyncpa [#allocation4], 0  ;;  %s762_s18 = smov [#allocation2]   ;;  %s714_s22 = scalar_lea.hbm %s1059_s0, 4096 }
   0x2   :  { %s17_s19 = sshll.u32 %s762_s18, 4  ;;  %p715_p0 = scmp.ne.s32.totalorder %s1059_s0, %s714_s22  ;;  %s18_s19 = int_to_ptr.vmem [resolvable:$true] %s17_s19 }
   0x3   :  { %p718_p1 = scmp.lt.u32.totalorder %s714_s22, %s1059_s0 }
   0x5   :  { %p720_p2 = pnand %p718_p1, %p715_p0 }
   0x7   :  { %723 = shalt.err (!%p720_p2)
}
   0x8   :  { %s724_s27 = scalar_lea.vmem %s18_s19, 4096  ;;  %p729_p4 = scmp.lt.s32.totalorder %s18_s19, %s18_s19 }
   0x9   :  { %p725_p3 = scmp.ne.s32.totalorder %s18_s19, %s724_s27  ;;  %p730_p5 = scmp.lt.s32.totalorder %s724_s27, %s724_s27 }
   0xb   :  { %p731_p6 = por %p730_p5, %p729_p4 }
   0xd   :  { %p732_p7 = pnand %p731_p6, %p725_p3 }
   0xf   :  { %735 = shalt.err (!%p732_p7)
}
  0x10   :  { %s763_s28 = smov 256   ;;  %s764_s29 = smov 16  }
  0x11   :  { %23 = dma.hbm_to_vmem [thread:$0]  %s1059_s0, 4096, %s18_s19, [#allocation3], %s763_s28, %s763_s28, %s764_s29  }
  0x12   :  { %758 = dma.done.wait [#allocation3], 4096  }
  0x13   :  { %759 = vsyncadd [#allocation3], 4294963200  ;;  %v814_v0 = vld [vmem:[#allocation2 + $0x80] sm:$0xff]  ;;  %v816_v1 = vld [vmem:[#allocation2 + $0x88] sm:$0xff]  ;;  %v765_v51 = vmov 0.0|0.0   ;;  %vm766_vm0 = vmmov 0  }
  0x14   :  { %v818_v2 = vld [vmem:[#allocation2] sm:$0xff]  ;;  %v91_v3 = vadd.f32 %v816_v1, %v814_v0  ;;  %v822_v4 = vld [vmem:[#allocation2 + $0x8] sm:$0xff]  ;;  %v824_v5 = vld [vmem:[#allocation2 + $0x90] sm:$0xff]  ;;  %667 = vmatprep.subr.bf16.mxu0 %v765_v51  ;;  %679 = vmatprep.subr.bf16.mxu1 %v765_v51  ;;  %v767_v61 = vmov 0.0   ;;  %vm174_vm1 = vcmask 130112   ;;  %vm181_vm2 = vcmask 195712  }
  0x15   :  { %v826_v6 = vld [vmem:[#allocation2 + $0x98] sm:$0xff]  ;;  %v67_v7 = vadd.f32 %v822_v4, %v818_v2  ;;  %v830_v8 = vld [vmem:[#allocation2 + $0x10] sm:$0xff]  ;;  %v838_v12 = vld [vmem:[#allocation2 + $0xa0] sm:$0xff]  ;;  %629 = vmatprep.mubr.msk.f32.mxu0 %vm766_vm0, %v767_v61  ;;  %664 = vmatprep.mubr.msk.f32.mxu1 %vm766_vm0, %v767_v61  ;;  %vm188_vm3 = vcmask 261312   ;;  %vm195_vm4 = vcmask 326912   ;;  %vm202_vm5 = vcmask 392512  }
  0x16   :  { %v832_v9 = vld [vmem:[#allocation2 + $0x18] sm:$0xff]  ;;  %92 = vadd.xlane.f32.xlu1 %v91_v3  ;;  %v94_v10 = vadd.f32 %v826_v6, %v824_v5  ;;  %v840_v13 = vld [vmem:[#allocation2 + $0xa8] sm:$0xff]  ;;  %v842_v14 = vld [vmem:[#allocation2 + $0x20] sm:$0xff]  ;;  %vm209_vm6 = vcmask 458112   ;;  %vm216_vm7 = vcmask 523712   ;;  %vm257_vm8 = vcmask 1041409  }
  0x17   :  { %68 = vadd.xlane.f32.xlu0 %v67_v7  ;;  %v70_v11 = vadd.f32 %v832_v9, %v830_v8  ;;  %v844_v15 = vld [vmem:[#allocation2 + $0x28] sm:$0xff]  ;;  %v97_v16 = vadd.f32 %v840_v13, %v838_v12  ;;  %v850_v18 = vld [vmem:[#allocation2 + $0xb0] sm:$0xff]  ;;  %v852_v19 = vld [vmem:[#allocation2 + $0xb8] sm:$0xff]  ;;  %vm259_vm9 = vcmask 523264  }
  0x18   :  { %v73_v17 = vadd.f32 %v844_v15, %v842_v14  ;;  %1072 = vst [vmem:[#allocation8_spill] sm:$0xff] %v852_v19  ;;  %v854_v20 = vld [vmem:[#allocation2 + $0x30] sm:$0xff]  ;;  %v856_v21 = vld [vmem:[#allocation2 + $0x38] sm:$0xff]  ;;  %v100_v22 = vadd.f32 %v852_v19, %v850_v18  ;;  %v862_v24 = vld [vmem:[#allocation2 + $0xc0] sm:$0xff] }
  0x19   :  { %v76_v23 = vadd.f32 %v856_v21, %v854_v20  ;;  %v864_v25 = vld [vmem:[#allocation2 + $0xc8] sm:$0xff]  ;;  %v866_v26 = vld [vmem:[#allocation2 + $0x40] sm:$0xff]  ;;  %v874_v30 = vld [vmem:[#allocation2 + $0xd0] sm:$0xff] }
  0x1a   :  { %95 = vadd.xlane.f32.xlu1 %v94_v10  ;;  %v868_v27 = vld [vmem:[#allocation2 + $0x48] sm:$0xff]  ;;  %v103_v28 = vadd.f32 %v864_v25, %v862_v24  ;;  %1073 = vst [vmem:[#allocation9_spill] sm:$0xff] %v874_v30  ;;  %v876_v31 = vld [vmem:[#allocation2 + $0xd8] sm:$0xff]  ;;  %v878_v32 = vld [vmem:[#allocation2 + $0x50] sm:$0xff] }
  0x1b   :  { %71 = vadd.xlane.f32.xlu0 %v70_v11  ;;  %v79_v29 = vadd.f32 %v868_v27, %v866_v26  ;;  %1074 = vst [vmem:[#allocation10_spill] sm:$0xff] %v876_v31  ;;  %v880_v33 = vld [vmem:[#allocation2 + $0x58] sm:$0xff]  ;;  %v106_v34 = vadd.f32 %v876_v31, %v874_v30  ;;  %v886_v36 = vld [vmem:[#allocation2 + $0xe0] sm:$0xff]  ;;  %v888_v37 = vld [vmem:[#allocation2 + $0xe8] sm:$0xff] }
  0x1c   :  { %v82_v35 = vadd.f32 %v880_v33, %v878_v32  ;;  %1075 = vst [vmem:[#allocation11_spill] sm:$0xff] %v886_v36  ;;  %1076 = vst [vmem:[#allocation12_spill] sm:$0xff] %v888_v37  ;;  %v890_v38 = vld [vmem:[#allocation2 + $0x60] sm:$0xff]  ;;  %v892_v39 = vld [vmem:[#allocation2 + $0x68] sm:$0xff]  ;;  %v109_v40 = vadd.f32 %v888_v37, %v886_v36 }
  0x1d   :  { %v85_v41 = vadd.f32 %v892_v39, %v890_v38  ;;  %v898_v42 = vld [vmem:[#allocation2 + $0xf0] sm:$0xff]  ;;  %v900_v43 = vld [vmem:[#allocation2 + $0xf8] sm:$0xff]  ;;  %v132_v48 = vld [vmem:[%s1060_s1] sm:$0xff] }
  0x1e   :  { %98 = vadd.xlane.f32.xlu1 %v97_v16  ;;  %1077 = vst [vmem:[#allocation13_spill] sm:$0xff] %v898_v42  ;;  %1078 = vst [vmem:[#allocation14_spill] sm:$0xff] %v900_v43  ;;  %v902_v44 = vld [vmem:[#allocation2 + $0x70] sm:$0xff]  ;;  %v904_v45 = vld [vmem:[#allocation2 + $0x78] sm:$0xff]  ;;  %v112_v46 = vadd.f32 %v900_v43, %v898_v42 }
  0x1f   :  { %74 = vadd.xlane.f32.xlu0 %v73_v17  ;;  %v88_v47 = vadd.f32 %v904_v45, %v902_v44  ;;  %v133_v49 = vld [vmem:[%s1060_s1 + $0x8] sm:$0xff]  ;;  %v134_v52 = vld [vmem:[%s1060_s1 + $0x10] sm:$0xff]  ;;  %v135_v53 = vld [vmem:[%s1060_s1 + $0x18] sm:$0xff] }
  0x20   :  { %v668_v50 = vpack.c.bf16 %v133_v49, %v132_v48  ;;  %v671_v54 = vpack.c.bf16 %v135_v53, %v134_v52  ;;  %v136_v55 = vld [vmem:[%s1060_s1 + $0x20] sm:$0xff]  ;;  %v137_v56 = vld [vmem:[%s1060_s1 + $0x28] sm:$0xff]  ;;  %v138_v58 = vld [vmem:[%s1060_s1 + $0x30] sm:$0xff] }
  0x21   :  { %v674_v57 = vpack.c.bf16 %v137_v56, %v136_v55  ;;  %v139_v59 = vld [vmem:[%s1060_s1 + $0x38] sm:$0xff]  ;;  %v333_v62 = vld [vmem:[%s1062_s3] sm:$0xff]  ;;  %v334_v63 = vld [vmem:[%s1062_s3 + $0x8] sm:$0xff]  ;;  %v163_v56 = vlaneseq }
  0x22   :  { %101 = vadd.xlane.f32.xlu1 %v100_v22  ;;  %669 = vmatpush3.bf16.msra.mxu0 %v668_v50  ;;  %v677_v60 = vpack.c.bf16 %v139_v59, %v138_v58  ;;  %v335_v3 = vld [vmem:[%s1062_s3 + $0x10] sm:$0xff]  ;;  %v680_v7 = vpack.c.bf16 %v334_v63, %v333_v62  ;;  %v336_v10 = vld [vmem:[%s1062_s3 + $0x18] sm:$0xff]  ;;  %v337_v16 = vld [vmem:[%s1062_s3 + $0x20] sm:$0xff] }
  0x23   :  { %77 = vadd.xlane.f32.xlu0 %v76_v23  ;;  %670 = vmatprep.subr.bf16.mxu0 %v765_v51  ;;  %v683_v11 = vpack.c.bf16 %v336_v10, %v335_v3  ;;  %v338_v17 = vld [vmem:[%s1062_s3 + $0x28] sm:$0xff]  ;;  %v339_v23 = vld [vmem:[%s1062_s3 + $0x30] sm:$0xff]  ;;  %v345_v48 = vld [vmem:[%s1062_s3 + $0x60] sm:$0xff]  ;;  %v164_v59 = vand.u32 127, %v163_v56  ;;  %v976_v61 = vshrl.u32 %v163_v56, 7 }
  0x24   :  { %681 = vmatpush3.bf16.msra.mxu1 %v680_v7  ;;  %v686_v22 = vpack.c.bf16 %v338_v17, %v337_v16  ;;  %v346_v49 = vld [vmem:[%s1062_s3 + $0x68] sm:$0xff] }
  0x25   :  { %682 = vmatprep.subr.bf16.mxu1 %v765_v51  ;;  %v698_v50 = vpack.c.bf16 %v346_v49, %v345_v48  ;;  %v169_v63 = vadd.s32 4294967288, %v164_v59  ;;  %v176_v3 = vadd.s32 4294967280, %v164_v59  ;;  %v183_v7 = vadd.s32 4294967272, %v164_v59 }
  0x26   :  { %104 = vadd.xlane.f32.xlu1 %v103_v28  ;;  %672 = vmatpush3.bf16.msra.mxu0 %v671_v54  ;;  %v340_v28 = vld [vmem:[%s1062_s3 + $0x38] sm:$0xff]  ;;  %v190_v10 = vadd.s32 4294967264, %v164_v59  ;;  %v197_v16 = vadd.s32 4294967256, %v164_v59 }
  0x27   :  { %80 = vadd.xlane.f32.xlu0 %v79_v29  ;;  %673 = vmatprep.subr.bf16.mxu0 %v765_v51  ;;  %v689_v29 = vpack.c.bf16 %v340_v28, %v339_v23  ;;  %v179_v23 = vsub.s32 %v176_v3, %v976_v61  ;;  %v204_v28 = vadd.s32 4294967248, %v164_v59 }
  0x28   :  { %684 = vmatpush3.bf16.msra.mxu1 %v683_v11 }
  0x29   :  { %685 = vmatprep.subr.bf16.mxu1 %v765_v51 }
  0x2a   :  { %107 = vadd.xlane.f32.xlu1 %v106_v34  ;;  %675 = vmatpush3.bf16.msra.mxu0 %v674_v57  ;;  %v341_v34 = vld [vmem:[%s1062_s3 + $0x40] sm:$0xff] }
  0x2b   :  { %83 = vadd.xlane.f32.xlu0 %v82_v35  ;;  %676 = vmatprep.subr.bf16.mxu0 %v765_v51  ;;  %v342_v35 = vld [vmem:[%s1062_s3 + $0x48] sm:$0xff] }
  0x2c   :  { %687 = vmatpush3.bf16.msra.mxu1 %v686_v22  ;;  %v172_v22 = vsub.s32 %v169_v63, %v976_v61 }
  0x2d   :  { %688 = vmatprep.subr.bf16.mxu1 %v765_v51 }
  0x2e   :  { %110 = vadd.xlane.f32.xlu1 %v109_v40  ;;  %678 = vmatpush3.bf16.msra.mxu0 %v677_v60  ;;  %v692_v40 = vpack.c.bf16 %v342_v35, %v341_v34  ;;  %v186_v34 = vsub.s32 %v183_v7, %v976_v61  ;;  %v193_v35 = vsub.s32 %v190_v10, %v976_v61  ;;  %v211_v10 = vadd.s32 4294967240, %v164_v59 }
  0x2f   :  { %86 = vadd.xlane.f32.xlu0 %v85_v41  ;;  %v343_v41 = vld [vmem:[%s1062_s3 + $0x50] sm:$0xff] }
  0x30   :  { %690 = vmatpush3.bf16.msra.mxu1 %v689_v29 }
  0x31   :  { %691 = vmatprep.subr.bf16.mxu1 %v765_v51 }
  0x32   :  { %113 = vadd.xlane.f32.xlu1 %v112_v46  ;;  %v344_v46 = vld [vmem:[%s1062_s3 + $0x58] sm:$0xff] }
  0x33   :  { %89 = vadd.xlane.f32.xlu0 %v88_v47  ;;  %v695_v47 = vpack.c.bf16 %v344_v46, %v343_v41  ;;  %v200_v46 = vsub.s32 %v197_v16, %v976_v61 }
  0x34   :  { %693 = vmatpush3.bf16.msra.mxu1 %v692_v40 }
  0x35   :  { %694 = vmatprep.subr.bf16.mxu1 %v765_v51 }
  0x38   :  { %696 = vmatpush3.bf16.msra.mxu1 %v695_v47 }
  0x39   :  { %697 = vmatprep.subr.bf16.mxu1 %v765_v51 }
  0x3c   :  { %699 = vmatpush3.bf16.msra.mxu1 %v698_v50 }
  0x3d   :  { %700 = vmatprep.subr.bf16.mxu1 %v765_v51  ;;  %v167_v51 = vsub.s32 %v164_v59, %v976_v61  ;;  %v214_v59 = vsub.s32 %v211_v10, %v976_v61  ;;  %v348_v10 = vld [vmem:[%s1062_s3 + $0x78] sm:$0xff] }
  0xa3   :  { %v93_v52 = vpop.xlane.xlu1 %92 }
  0xa4   :  { %v69_v53 = vpop.xlane.xlu0 %68  ;;  %v124_v48 = vmul.f32 0.00390625, %v93_v52 }
  0xa5   :  { %v116_v63 = vmul.f32 0.00390625, %v69_v53 }
  0xa6   :  { %v221_v37 = vrot.slane %v124_v48, %v167_v51 }
  0xa7   :  { %v96_v54 = vpop.xlane.xlu1 %95  ;;  %v168_v19 = vrot.slane %v116_v63, %v167_v51 }
  0xa8   :  { %v72_v55 = vpop.xlane.xlu0 %71  ;;  %v125_v29 = vmul.f32 0.00390625, %v96_v54  ;;  %v207_v54 = vsub.s32 %v204_v28, %v976_v61 }
  0xa9   :  { %v117_v40 = vmul.f32 0.00390625, %v72_v55 }
  0xaa   :  { %v225_v7 = vrot.slane %v125_v29, %v172_v22 }
  0xab   :  { %v99_v57 = vpop.xlane.xlu1 %98  ;;  %v173_v55 = vrot.slane %v117_v40, %v172_v22 }
  0xac   :  { %v75_v58 = vpop.xlane.xlu0 %74  ;;  %v126_v41 = vmul.f32 0.00390625, %v99_v57  ;;  %v226_v28 = vsel %vm174_vm1, %v225_v7, %v221_v37  ;;  %v347_v7 = vld [vmem:[%s1062_s3 + $0x70] sm:$0xff] }
  0xad   :  { %v118_v49 = vmul.f32 0.00390625, %v75_v58  ;;  %v175_v22 = vsel %vm174_vm1, %v173_v55, %v168_v19  ;;  %v701_v55 = vpack.c.bf16 %v348_v10, %v347_v7  ;;  %v1079_v7 = vld [vmem:[#allocation8_spill] sm:$0xff] }
  0xae   :  { %v230_v57 = vrot.slane %v126_v41, %v179_v23 }
  0xaf   :  { %v102_v60 = vpop.xlane.xlu1 %101  ;;  %v180_v52 = vrot.slane %v118_v49, %v179_v23  ;;  %702 = vmatpush3.bf16.msra.mxu1 %v701_v55  ;;  %v1080_v55 = vld [vmem:[#allocation11_spill] sm:$0xff] }
  0xb0   :  { %v78_v62 = vpop.xlane.xlu0 %77  ;;  %v127_v50 = vmul.f32 0.00390625, %v102_v60  ;;  %v231_v40 = vsel %vm181_vm2, %v230_v57, %v226_v28  ;;  %v583_v57 = vld [vmem:[%s1061_s2] ss:$0 sm:$0xff]  ;;  %s768_s2 = smov [#allocation5]  }
  0xb1   :  { %v119_v3 = vmul.f32 0.00390625, %v78_v62  ;;  %v182_v48 = vsel %vm181_vm2, %v180_v52, %v175_v22  ;;  %v434_v22 = vsub.s32 0, %v976_v61  ;;  %s571_s3 = sshll.u32 %s768_s2, 4  ;;  %s572_s3 = int_to_ptr.vmem [resolvable:$true] %s571_s3 }
  0xb2   :  { %v235_v58 = vrot.slane %v127_v50, %v186_v34  ;;  %p741_p9 = scmp.lt.s32.totalorder %s572_s3, %s572_s3 }
  0xb3   :  { %v105_v11 = vpop.xlane.xlu1 %104  ;;  %v187_v53 = vrot.slane %v119_v3, %v186_v34 }
  0xb4   :  { %v81_v17 = vpop.xlane.xlu0 %80  ;;  %v128_v43 = vmul.f32 0.00390625, %v105_v11  ;;  %v236_v51 = vsel %vm188_vm3, %v235_v58, %v231_v40 }
  0xb5   :  { %v120_v42 = vmul.f32 0.00390625, %v81_v17  ;;  %v189_v37 = vsel %vm188_vm3, %v187_v53, %v182_v48  ;;  %v585_v53 = vld [vmem:[%s1063_s4] ss:$0 sm:$0xff]  ;;  %s736_s4 = scalar_lea.vmem %s572_s3, 4096 }
  0xb6   :  { %v240_v62 = vrot.slane %v128_v43, %v193_v35  ;;  %p737_p8 = scmp.ne.s32.totalorder %s572_s3, %s736_s4  ;;  %p742_p10 = scmp.lt.s32.totalorder %s736_s4, %s736_s4 }
  0xb7   :  { %v108_v47 = vpop.xlane.xlu1 %107  ;;  %v194_v29 = vrot.slane %v120_v42, %v193_v35 }
  0xb8   :  { %v84_v56 = vpop.xlane.xlu0 %83  ;;  %v129_v31 = vmul.f32 0.00390625, %v108_v47  ;;  %p743_p11 = por %p742_p10, %p741_p9 }
  0xb9   :  { %v121_v30 = vmul.f32 0.00390625, %v84_v56  ;;  %v196_v19 = vsel %vm195_vm4, %v194_v29, %v189_v37 }
  0xba   :  { %v245_v17 = vrot.slane %v129_v31, %v200_v46  ;;  %v241_v31 = vsel %vm195_vm4, %v240_v62, %v236_v51  ;;  %p744_p12 = pnand %p743_p11, %p737_p8 }
  0xbb   :  { %v111_v16 = vpop.xlane.xlu1 %110  ;;  %v201_v41 = vrot.slane %v121_v30, %v200_v46 }
  0xbc   :  { %v130_v60 = vmul.f32 0.00390625, %v111_v16  ;;  %v87_v36 = vpop.xlane.xlu0 %86  ;;  %v246_v35 = vsel %vm202_vm5, %v245_v17, %v241_v31 }
  0xbd   :  { %v122_v11 = vmul.f32 0.00390625, %v87_v36  ;;  %v203_v46 = vsel %vm202_vm5, %v201_v41, %v196_v19 }
  0xbe   :  { %v250_v47 = vrot.slane %v130_v60, %v207_v54 }
  0xbf   :  { %v114_v23 = vpop.xlane.xlu1 %113  ;;  %v208_v34 = vrot.slane %v122_v11, %v207_v54 }
  0xc0   :  { %v131_v43 = vmul.f32 0.00390625, %v114_v23  ;;  %v90_v36 = vpop.xlane.xlu0 %89  ;;  %v251_v49 = vsel %vm209_vm6, %v250_v47, %v246_v35  ;;  %v469_v47 = vsub.s32 1, %v976_v61 }
  0xc1   :  { %v123_v42 = vmul.f32 0.00390625, %v90_v36  ;;  %v210_v56 = vsel %vm209_vm6, %v208_v34, %v203_v46 }
  0xc2   :  { %v255_v30 = vrot.slane %v131_v43, %v214_v59 }
  0xc3   :  { %v215_v50 = vrot.slane %v123_v42, %v214_v59 }
  0xc4   :  { %v256_v63 = vsel %vm216_vm7, %v255_v30, %v251_v49 }
  0xc5   :  { %v217_v3 = vsel %vm216_vm7, %v215_v50, %v210_v56 }
  0xc6   :  { %v258_v54 = vsel %vm257_vm8, %v256_v63, %v217_v3 }
  0xc7   :  { %630 = vmatmul.mubr.msk.f32.vlgmr.msra.gmra.mrb[0].mxu0 %vm259_vm9, %v258_v54 }
 0x19a   :  { %v328_v16 = vpop.f32.mrb[0].mxu0 }
 0x19b   :  { %v329_v52 = vadd.f32 %v583_v57, %v328_v16  ;;  %v631_v58 = vpop.f32.mrb[1].mxu0  ;;  %v1081_v16 = vld [vmem:[#allocation12_spill] sm:$0xff] }
 0x19d   :  { %v332_v60 = vmax.f32 %v329_v52, 0.0  ;;  %v1083_v52 = vld [vmem:[#allocation10_spill] sm:$0xff] }
 0x19f   :  { %665 = vmatmul.mubr.f32.vlgmr.msra.gmra.mrb[0].mxu1 %v332_v60  ;;  %v1084_v60 = vld [vmem:[#allocation13_spill] sm:$0xff] }
 0x272   :  { %v422_v62 = vpop.f32.mrb[0].mxu1 }
 0x273   :  { %v423_v11 = vadd.f32 %v585_v53, %v422_v62  ;;  %v666_v28 = vpop.f32.mrb[1].mxu1  ;;  %v1085_v62 = vld [vmem:[#allocation14_spill] sm:$0xff] }
 0x275   :  { %v586_v29 = vmul.f32 -1.442695, %v423_v11 }
 0x277   :  { %710 = vpow2.f32 %v586_v29 }
 0x281   :  { %v711_v17 = vpop.eup %710 }
 0x282   :  { %v429_v59 = vadd.f32 1.0, %v711_v17 }
 0x284   :  { %712 = vrcp.f32 %v429_v59 }
 0x28e   :  { %v713_v40 = vpop.eup %712 }
 0x28f   :  { %v435_v41 = vrot.slane %v713_v40, %v434_v22  ;;  %v470_v23 = vrot.slane %v713_v40, %v469_v47 }
 0x291   :  { %441 = vbcast.lane.b32.xlu1 %v435_v41, 264  ;;  %437 = vbcast.lane.b32.xlu0 %v435_v41, 256 }
 0x295   :  { %445 = vbcast.lane.b32.xlu1 %v435_v41, 272  ;;  %453 = vbcast.lane.b32.xlu0 %v435_v41, 288 }
 0x299   :  { %449 = vbcast.lane.b32.xlu1 %v435_v41, 280  ;;  %461 = vbcast.lane.b32.xlu0 %v435_v41, 304 }
 0x29d   :  { %457 = vbcast.lane.b32.xlu1 %v435_v41, 296  ;;  %472 = vbcast.lane.b32.xlu0 %v470_v23, 256 }
 0x2a1   :  { %465 = vbcast.lane.b32.xlu1 %v435_v41, 312  ;;  %480 = vbcast.lane.b32.xlu0 %v470_v23, 272 }
 0x2a5   :  { %476 = vbcast.lane.b32.xlu1 %v470_v23, 264  ;;  %488 = vbcast.lane.b32.xlu0 %v470_v23, 288 }
 0x2a9   :  { %484 = vbcast.lane.b32.xlu1 %v470_v23, 280  ;;  %496 = vbcast.lane.b32.xlu0 %v470_v23, 304 }
 0x2ad   :  { %492 = vbcast.lane.b32.xlu1 %v470_v23, 296 }
 0x2b1   :  { %500 = vbcast.lane.b32.xlu1 %v470_v23, 312 }
 0x303   :  { %v442_v48 = vpop.permute.xlu1 %441  ;;  %v438_v51 = vpop.permute.xlu0 %437 }
 0x304   :  { %v504_v34 = vmul.f32 %v442_v48, %v830_v8  ;;  %v505_v43 = vmul.f32 %v442_v48, %v832_v9  ;;  %v502_v61 = vmul.f32 %v438_v51, %v818_v2  ;;  %v503_v36 = vmul.f32 %v438_v51, %v822_v4 }
 0x306   :  { %536 = vst [vmem:[#allocation5 + $0x10] sm:$0xff] %v504_v34  ;;  %537 = vst [vmem:[#allocation5 + $0x18] sm:$0xff] %v505_v43 }
 0x307   :  { %534 = vst [vmem:[#allocation5] sm:$0xff] %v502_v61  ;;  %535 = vst [vmem:[#allocation5 + $0x8] sm:$0xff] %v503_v36  ;;  %v446_v37 = vpop.permute.xlu1 %445  ;;  %v454_v31 = vpop.permute.xlu0 %453 }
 0x308   :  { %v506_v42 = vmul.f32 %v446_v37, %v842_v14  ;;  %v507_v19 = vmul.f32 %v446_v37, %v844_v15  ;;  %v510_v35 = vmul.f32 %v454_v31, %v866_v26  ;;  %v511_v8 = vmul.f32 %v454_v31, %v868_v27 }
 0x30a   :  { %538 = vst [vmem:[#allocation5 + $0x20] sm:$0xff] %v506_v42  ;;  %539 = vst [vmem:[#allocation5 + $0x28] sm:$0xff] %v507_v19 }
 0x30b   :  { %542 = vst [vmem:[#allocation5 + $0x40] sm:$0xff] %v510_v35  ;;  %543 = vst [vmem:[#allocation5 + $0x48] sm:$0xff] %v511_v8  ;;  %v450_v2 = vpop.permute.xlu1 %449  ;;  %v462_v4 = vpop.permute.xlu0 %461 }
 0x30c   :  { %v508_v9 = vmul.f32 %v450_v2, %v854_v20  ;;  %v509_v30 = vmul.f32 %v450_v2, %v856_v21  ;;  %v514_v46 = vmul.f32 %v462_v4, %v890_v38  ;;  %v515_v14 = vmul.f32 %v462_v4, %v892_v39 }
 0x30e   :  { %540 = vst [vmem:[#allocation5 + $0x30] sm:$0xff] %v508_v9  ;;  %541 = vst [vmem:[#allocation5 + $0x38] sm:$0xff] %v509_v30 }
 0x30f   :  { %546 = vst [vmem:[#allocation5 + $0x60] sm:$0xff] %v514_v46  ;;  %547 = vst [vmem:[#allocation5 + $0x68] sm:$0xff] %v515_v14  ;;  %v458_v15 = vpop.permute.xlu1 %457  ;;  %v473_v26 = vpop.permute.xlu0 %472 }
 0x310   :  { %v512_v27 = vmul.f32 %v458_v15, %v878_v32  ;;  %v513_v49 = vmul.f32 %v458_v15, %v880_v33  ;;  %v518_v50 = vmul.f32 %v473_v26, %v814_v0  ;;  %v519_v20 = vmul.f32 %v473_v26, %v816_v1 }
 0x312   :  { %544 = vst [vmem:[#allocation5 + $0x50] sm:$0xff] %v512_v27  ;;  %545 = vst [vmem:[#allocation5 + $0x58] sm:$0xff] %v513_v49 }
 0x313   :  { %550 = vst [vmem:[#allocation5 + $0x80] sm:$0xff] %v518_v50  ;;  %551 = vst [vmem:[#allocation5 + $0x88] sm:$0xff] %v519_v20  ;;  %v466_v21 = vpop.permute.xlu1 %465  ;;  %v481_v38 = vpop.permute.xlu0 %480 }
 0x314   :  { %v516_v39 = vmul.f32 %v466_v21, %v902_v44  ;;  %v517_v56 = vmul.f32 %v466_v21, %v904_v45  ;;  %v522_v63 = vmul.f32 %v481_v38, %v838_v12  ;;  %v523_v32 = vmul.f32 %v481_v38, %v840_v13 }
 0x316   :  { %548 = vst [vmem:[#allocation5 + $0x70] sm:$0xff] %v516_v39  ;;  %549 = vst [vmem:[#allocation5 + $0x78] sm:$0xff] %v517_v56 }
 0x317   :  { %554 = vst [vmem:[#allocation5 + $0xa0] sm:$0xff] %v522_v63  ;;  %555 = vst [vmem:[#allocation5 + $0xa8] sm:$0xff] %v523_v32  ;;  %v477_v0 = vpop.permute.xlu1 %476  ;;  %v489_v1 = vpop.permute.xlu0 %488 }
 0x318   :  { %v520_v33 = vmul.f32 %v477_v0, %v824_v5  ;;  %v521_v3 = vmul.f32 %v477_v0, %v826_v6  ;;  %v526_v54 = vmul.f32 %v489_v1, %v862_v24  ;;  %v527_v44 = vmul.f32 %v489_v1, %v864_v25  ;;  %v1082_v24 = vld [vmem:[#allocation9_spill] sm:$0xff] }
 0x31a   :  { %552 = vst [vmem:[#allocation5 + $0x90] sm:$0xff] %v520_v33  ;;  %553 = vst [vmem:[#allocation5 + $0x98] sm:$0xff] %v521_v3 }
 0x31b   :  { %558 = vst [vmem:[#allocation5 + $0xc0] sm:$0xff] %v526_v54  ;;  %559 = vst [vmem:[#allocation5 + $0xc8] sm:$0xff] %v527_v44  ;;  %v485_v12 = vpop.permute.xlu1 %484  ;;  %v497_v13 = vpop.permute.xlu0 %496 }
 0x31c   :  { %v524_v45 = vmul.f32 %v485_v12, %v850_v18  ;;  %v525_v10 = vmul.f32 %v485_v12, %v1079_v7  ;;  %v530_v57 = vmul.f32 %v497_v13, %v1080_v55  ;;  %v531_v5 = vmul.f32 %v497_v13, %v1081_v16 }
 0x31e   :  { %556 = vst [vmem:[#allocation5 + $0xb0] sm:$0xff] %v524_v45  ;;  %557 = vst [vmem:[#allocation5 + $0xb8] sm:$0xff] %v525_v10 }
 0x31f   :  { %562 = vst [vmem:[#allocation5 + $0xe0] sm:$0xff] %v530_v57  ;;  %563 = vst [vmem:[#allocation5 + $0xe8] sm:$0xff] %v531_v5  ;;  %v493_v6 = vpop.permute.xlu1 %492 }
 0x320   :  { %v528_v25 = vmul.f32 %v493_v6, %v1082_v24  ;;  %v529_v58 = vmul.f32 %v493_v6, %v1083_v52 }
 0x322   :  { %560 = vst [vmem:[#allocation5 + $0xd0] sm:$0xff] %v528_v25  ;;  %561 = vst [vmem:[#allocation5 + $0xd8] sm:$0xff] %v529_v58 }
 0x323   :  { %v501_v18 = vpop.permute.xlu1 %500 }
 0x324   :  { %v532_v53 = vmul.f32 %v501_v18, %v1084_v60  ;;  %v533_v11 = vmul.f32 %v501_v18, %v1085_v62 }
 0x326   :  { %564 = vst [vmem:[#allocation5 + $0xf0] sm:$0xff] %v532_v53  ;;  %565 = vst [vmem:[#allocation5 + $0xf8] sm:$0xff] %v533_v11 }
 0x327   :  { %747 = shalt.err (!%p744_p12)
}
 0x328   :  { %s748_s10 = scalar_lea.hbm %s1064_s5, 4096 }
 0x329   :  { %p749_p13 = scmp.ne.s32.totalorder %s1064_s5, %s748_s10  ;;  %p752_p0 = scmp.lt.u32.totalorder %s748_s10, %s1064_s5 }
 0x32b   :  { %p754_p1 = pnand %p752_p0, %p749_p13 }
 0x32d   :  { %757 = shalt.err (!%p754_p1)
}
 0x32e   :  { %577 = dma.vmem_to_hbm [thread:$0]  %s572_s3, 4096, %s1064_s5, [#allocation4], %s763_s28, %s763_s28, %s764_s29  }
 0x32f   :  { %760 = dma.done.wait [#allocation4], 4096  }
 0x330   :  { %761 = vsyncadd [#allocation4], 4294963200 }
 0x331   :  { %581 = vsyncpa [#allocation3], 1 }
 0x332   :  { %582 = vsyncpa [#allocation4], 1 }

</bundles_post_ra>
